<compile_context>
chip_gen: v6e
topology: v6e:2x2x1
jax: 0.10.0
libtpu: 0.0.40
codegen_flags: <defaults>
</compile_context>

<pallas_src>
import functools
import math

import jax
import jax.numpy as jnp
from jax import lax
from jax.experimental import pallas as pl
from jax.experimental.pallas import tpu as pltpu


_MANT_MASK = 0x007FFFFF      # 23 mantissa bits
_EXP_ONE = 0x3F800000        # exponent bits of 1.0f


def _affine_from_f12(f12, zmin, zmax, out_dtype):
    """Map f in [1, 2) to uniform in [zmin, zmax) with a folded affine."""
    scale = float(zmax) - float(zmin)
    if float(zmin) == 0.0 and float(zmax) == 1.0:
        z = f12 - 1.0
    else:
        z = (float(zmin) - scale) + scale * f12
    # TODO(synk): for bf16 outputs the cast can round values just below zmax up
    # to exactly zmax, slightly violating the strict upper bound.
    return z.astype(out_dtype)


def _uniform_prng_kernel(seed_ref, z_ref, *, zmin, zmax):
    """TPU path: in-kernel hardware PRNG, write-only streaming kernel."""
    golden = jnp.int32(-1640531527)          # 0x9E3779B9 as int32
    mixed = seed_ref[0] ^ (pl.program_id(0) * golden + jnp.int32(0x5BD1E995))
    pltpu.prng_seed(mixed)

    bits = pltpu.prng_random_bits(z_ref.shape)
    if bits.dtype != jnp.int32:
        bits = pltpu.bitcast(bits, jnp.int32)
    # Mantissa trick: 23 random bits under an exponent of 1.0 -> float in [1,2).
    f12 = pltpu.bitcast((bits & jnp.int32(_MANT_MASK)) | jnp.int32(_EXP_ONE),
                        jnp.float32)
    z_ref[...] = _affine_from_f12(f12, zmin, zmax, z_ref.dtype)


def _uniform_from_bits_kernel(bits_ref, z_ref, *, zmin, zmax):
    """Portable path (interpret / non-TPU): random bits streamed in."""
    bits = lax.bitcast_convert_type(bits_ref[...], jnp.int32)
    f12 = lax.bitcast_convert_type(
        (bits & jnp.int32(_MANT_MASK)) | jnp.int32(_EXP_ONE), jnp.float32)
    z_ref[...] = _affine_from_f12(f12, zmin, zmax, z_ref.dtype)


def _vmem_budget():
    """Per-step output-tile byte budget + explicit scoped-VMEM limit."""
    vmem_bytes = 128 << 20                      # v5e / v6e physical
    try:
        info = pltpu.get_tpu_info()
        vmem_bytes = int(getattr(info, "vmem_capacity_bytes", vmem_bytes))
    except Exception:
        pass
    # Output is double-buffered; leave headroom for compiler internal scratch.
    budget = max(4 << 20, min(16 << 20, vmem_bytes // 8))
    vmem_limit = int(min(vmem_bytes * 3 // 4, 4 * budget))
    return budget, vmem_limit


def _plan_flat_tiles(n_elems, itemsize, budget_bytes, min_steps=4):
    """Lane-dense 2-D tiling (rows x LANE) of a flat buffer of n_elems."""
    lane_cands = (4096, 2048, 1024, 512, 256, 128)
    lane = None
    # Prefer a lane width that divides n (no padding) and leaves enough rows
    # for several grid steps (pipelining + v7x megacore).
    for cand in lane_cands:
        if n_elems % cand == 0 and n_elems // cand >= 8 * min_steps:
            lane = cand
            break
    if lane is None:
        for cand in lane_cands:
            if n_elems % cand == 0:
                lane = cand
                break
    if lane is None:
        lane = 128                               # padding required
    rows = pl.cdiv(n_elems, lane)
    # Row tile: multiple of 8, within the per-step byte budget, and small enough
    # to leave >= min_steps grid steps when there is enough work.
    tile_rows = max(8, (budget_bytes // (lane * itemsize)) // 8 * 8)
    tile_rows = min(tile_rows, max(8, ((pl.cdiv(rows, min_steps) + 7) // 8) * 8))
    n_steps = pl.cdiv(rows, tile_rows)
    return lane, tile_rows, n_steps


def uniform_encoder_forward(x, num_samples=1, zmin=0.0, zmax=1.0, seed=0):
    """Pallas equivalent of Uniform.forward(x, num_samples)."""
    B, D = x.shape
    S = int(num_samples)
    n = B * S * D
    out_dtype = x.dtype
    itemsize = jnp.dtype(out_dtype).itemsize

    budget, vmem_limit = _vmem_budget()
    lane, tile_rows, n_steps = _plan_flat_tiles(n, itemsize, budget)
    rows_total = n_steps * tile_rows

    # log_p is a compile-time constant -> no kernel writeback stream for it.
    logp_val = -math.log(float(zmax) - float(zmin))
    log_p = jnp.full((B, S), logp_val, dtype=jnp.float32)

    cparams = pltpu.CompilerParams(
        dimension_semantics=("parallel",),
        vmem_limit_bytes=vmem_limit)

    if jax.default_backend() == "tpu":
        # Optimal path: zero input bytes, hardware PRNG, write-only streaming.
        kernel = functools.partial(_uniform_prng_kernel,
                                   zmin=float(zmin), zmax=float(zmax))
        seed_arr = jnp.asarray([int(seed)], dtype=jnp.int32)
        cost = pl.CostEstimate(
            flops=2 * rows_total * lane,
            transcendentals=0,
            bytes_accessed=itemsize * rows_total * lane)
        z_pad = pl.pallas_call(
            kernel,
            out_shape=jax.ShapeDtypeStruct((rows_total, lane), out_dtype),
            grid_spec=pltpu.PrefetchScalarGridSpec(
                num_scalar_prefetch=1,          # seed -> SMEM before the grid
                grid=(n_steps,),
                in_specs=[],
                out_specs=pl.BlockSpec((tile_rows, lane),
                                       lambda i, seed_ref: (i, 0)),
            ),
            compiler_params=cparams,
            cost_estimate=cost,
        )(seed_arr)
    else:
        # Portable fallback (interpret mode / CPU): the TPU PRNG primitives have
        # no lowering off-TPU, so stream precomputed random bits through instead.
        key = jax.random.fold_in(jax.random.PRNGKey(0), int(seed))
        bits = jax.random.bits(key, (rows_total, lane), dtype=jnp.uint32)
        kernel = functools.partial(_uniform_from_bits_kernel,
                                   zmin=float(zmin), zmax=float(zmax))
        z_pad = pl.pallas_call(
            kernel,
            out_shape=jax.ShapeDtypeStruct((rows_total, lane), out_dtype),
            grid=(n_steps,),
            in_specs=[pl.BlockSpec((tile_rows, lane), lambda i: (i, 0))],
            out_specs=pl.BlockSpec((tile_rows, lane), lambda i: (i, 0)),
            compiler_params=cparams,
        )(bits)

    # Row-major flat view back to the torch layout (free when no padding).
    z = z_pad.reshape(-1)[:n].reshape(B, S, D)
    return z, log_p


if __name__ == "__main__":
    B, D, S = 2, 4, 8
    zmin, zmax = -1.0, 2.0

    key = jax.random.PRNGKey(0)
    # x's values are overwritten by .uniform_() in the torch spec; only its
    # shape / dtype matter.
    x = jax.random.normal(key, (B, D), jnp.float32)

    z, log_p = uniform_encoder_forward(x, num_samples=S, zmin=zmin, zmax=zmax,
                                       seed=0)
    jax.block_until_ready((z, log_p))

    # Shape / dtype contract of Uniform.forward.
    assert z.shape == (B, S, D) and z.dtype == x.dtype
    assert log_p.shape == (B, S)
    # Samples live in [zmin, zmax) and are genuinely random.
    assert bool(jnp.all(z >= zmin)) and bool(jnp.all(z < zmax))
    assert bool(jnp.std(z) > 0.0)
    # log_p == -log(zmax - zmin) everywhere.
    assert jnp.allclose(log_p, -math.log(zmax - zmin), rtol=1e-6, atol=1e-6)

    print("KERNEL_OK")
</pallas_src>

<mosaic_0001>
module attributes {stable_mosaic.version = 11 : i64} {
  func.func @_uniform_from_bits_kernel(%arg0: i32, %arg1: memref<8x128xi32, #tpu.memory_space<vmem>>, %arg2: memref<8x128xf32, #tpu.memory_space<vmem>>) attributes {dimension_semantics = [#tpu.dimension_semantics<parallel>], iteration_bounds = array<i64: 1>, scalar_prefetch = 0 : i64, scratch_operands = 0 : i64, tpu.core_type = #tpu.core_type<tc>, window_params = [{transform_indices = @transform_0, window_bounds = array<i64: 8, 128>}, {transform_indices = @transform_1, window_bounds = array<i64: 8, 128>}]} {
    %c0 = arith.constant 0 : index
    %c0_0 = arith.constant 0 : index
    %0 = vector.load %arg1[%c0, %c0_0] : memref<8x128xi32, #tpu.memory_space<vmem>>, vector<8x128xi32>
    %1 = tpu.bitcast %0 : vector<8x128xi32> -> vector<8x128xi32>
    %c8388607_i32 = arith.constant 8388607 : i32
    %2 = vector.broadcast %c8388607_i32 : i32 to vector<8x128xi32>
    %3 = arith.andi %1, %2 : vector<8x128xi32>
    %c1065353216_i32 = arith.constant 1065353216 : i32
    %4 = vector.broadcast %c1065353216_i32 : i32 to vector<8x128xi32>
    %5 = arith.ori %3, %4 : vector<8x128xi32>
    %6 = tpu.bitcast %5 : vector<8x128xi32> -> vector<8x128xf32>
    %cst = arith.constant 3.000000e+00 : f32
    %7 = vector.broadcast %cst : f32 to vector<8x128xf32>
    %8 = arith.mulf %7, %6 : vector<8x128xf32>
    %cst_1 = arith.constant -4.000000e+00 : f32
    %9 = vector.broadcast %cst_1 : f32 to vector<8x128xf32>
    %10 = arith.addf %9, %8 : vector<8x128xf32>
    %c0_2 = arith.constant 0 : index
    %c0_3 = arith.constant 0 : index
    %11 = vector.load %arg2[%c0_2, %c0_3] : memref<8x128xf32, #tpu.memory_space<vmem>>, vector<8x128xf32>
    tpu.vector_store %arg2[%c0_2, %c0_3], %10 {strides = array<i32>} : memref<8x128xf32, #tpu.memory_space<vmem>>, vector<8x128xf32>,
    return
  }
  func.func @transform_0(%arg0: i32) -> (i32, i32) {
    %c0_i32 = arith.constant 0 : i32
    %c0_i32_0 = arith.constant 0 : i32
    return %arg0, %c0_i32 : i32, i32
  }
  func.func @transform_1(%arg0: i32) -> (i32, i32) {
    %c0_i32 = arith.constant 0 : i32
    %c0_i32_0 = arith.constant 0 : i32
    return %arg0, %c0_i32 : i32, i32
  }
}

</mosaic_0001>

<bundles_post_ra>
// kernel: tpu_custom_call.1
= control target key start
LH: loop header
LB: loop body
LE: loop exit
PB: predicated region body
PF: predicated region fallthrough
CT: control target
= control target key end

     0   :  { %6 = vsyncpa [#allocation3], 0  ;;  %s107_s0 = inlined_call_operand.hbm [shape: u32[8,128], index: 0, kind: input, shape index: {}]   ;;  %s108_s1 = inlined_call_operand.hbm [shape: f32[8,128], index: 1, kind: output, shape index: {}]  }
   0x1   :  { %7 = vsyncpa [#allocation4], 0  ;;  %s89_s6 = smov [#allocation2]  }
   0x2   :  { %s14_s7 = sshll.u32 %s89_s6, 4  ;;  %s15_s7 = int_to_ptr.vmem [resolvable:$true] %s14_s7 }
   0x3   :  { %s53_s8 = scalar_lea.vmem %s15_s7, 128  ;;  %p58_p1 = scmp.lt.s32.totalorder %s15_s7, %s15_s7 }
   0x4   :  { %p54_p0 = scmp.ne.s32.totalorder %s15_s7, %s53_s8  ;;  %p59_p2 = scmp.lt.s32.totalorder %s53_s8, %s53_s8 }
   0x6   :  { %p60_p3 = por %p59_p2, %p58_p1 }
   0x8   :  { %p61_p4 = pnand %p60_p3, %p54_p0 }
   0xa   :  { %64 = shalt.err (!%p61_p4)
}
   0xb   :  { %17 = dma.hbm_to_vmem [thread:$0]  %s107_s0, 128, %s15_s7, [#allocation3]  }
   0xc   :  { %85 = dma.done.wait [#allocation3], 128  }
   0xd   :  { %86 = vsyncadd [#allocation3], 4294967168  ;;  %v21_v0 = vld [vmem:[#allocation2] sm:$0xff]  ;;  %s90_s11 = smov [#allocation5]  }
   0xe   :  { %v22_v1 = vand.u32 8388607, %v21_v0  ;;  %s34_s12 = sshll.u32 %s90_s11, 4  ;;  %s35_s12 = int_to_ptr.vmem [resolvable:$true] %s34_s12 }
   0xf   :  { %s65_s13 = scalar_lea.vmem %s35_s12, 128  ;;  %p70_p6 = scmp.lt.s32.totalorder %s35_s12, %s35_s12 }
  0x10   :  { %v23_v2 = vor.u32 1065353216, %v22_v1  ;;  %p66_p5 = scmp.ne.s32.totalorder %s35_s12, %s65_s13  ;;  %p71_p7 = scmp.lt.s32.totalorder %s65_s13, %s65_s13 }
  0x12   :  { %v25_v3 = vmul.f32 3.0, %v23_v2  ;;  %p72_p8 = por %p71_p7, %p70_p6 }
  0x14   :  { %v26_v4 = vadd.f32 -4.0, %v25_v3  ;;  %p73_p9 = pnand %p72_p8, %p66_p5 }
  0x16   :  { %27 = vst [vmem:[#allocation5] sm:$0xff] %v26_v4 }
  0x17   :  { %76 = shalt.err (!%p73_p9)
}
  0x18   :  { %37 = dma.vmem_to_hbm [thread:$0]  %s35_s12, 128, %s108_s1, [#allocation4]  }
  0x19   :  { %87 = dma.done.wait [#allocation4], 128  }
  0x1a   :  { %88 = vsyncadd [#allocation4], 4294967168 }
  0x1b   :  { %41 = vsyncpa [#allocation3], 1 }
  0x1c   :  { %42 = vsyncpa [#allocation4], 1 }

</bundles_post_ra>
